<compile_context>
chip_gen: v7x
topology: tpu7x:2x2x1
jax: 0.10.0
libtpu: 0.0.40
codegen_flags: <defaults>
</compile_context>

<pallas_src>
import math
import functools

import numpy as np
import jax
import jax.numpy as jnp
from jax import lax
from jax.experimental import pallas as pl
from jax.experimental.pallas import tpu as pltpu

_EPS = 1e-6                 # reference LayerNorm eps
_MXU_DT = jnp.bfloat16      # MXU matmul input dtype (accumulation stays f32)


# ----------------------------------------------------------------------------
# Generation-aware VMEM budgeting.
# ----------------------------------------------------------------------------
def _vmem_capacity_bytes():
    try:
        return int(pltpu.get_tpu_info().vmem_capacity_bytes)
    except Exception:
        return None


_VMEM_CAP = _vmem_capacity_bytes()
# scoped VMEM limit (None -> compiler default); leave headroom below physical.
_VMEM_LIMIT = None if _VMEM_CAP is None else min(int(_VMEM_CAP * 3 // 4),
                                                 112 * 1024 * 1024)
# per streamed operand budget (double-buffered), generation-aware.
_STREAM_BUDGET = (8 * 1024 * 1024 if _VMEM_CAP is None
                  else max(2 * 1024 * 1024,
                           min(_VMEM_CAP // 8, 16 * 1024 * 1024)))


def _cparams(sem):
    return pltpu.CompilerParams(dimension_semantics=sem,
                                vmem_limit_bytes=_VMEM_LIMIT)


# ----------------------------------------------------------------------------
# Host-side (numpy) helpers: deterministic pos-embed + interpolation operators.
# ----------------------------------------------------------------------------
def get_1d_sincos_pos_embed_from_grid(embed_dim, pos):
    assert embed_dim % 2 == 0
    omega = np.arange(embed_dim // 2, dtype=np.float32)
    omega /= embed_dim / 2.0
    omega = 1.0 / 10000 ** omega
    pos = pos.reshape(-1)
    out = np.einsum('m,d->md', pos, omega)
    return np.concatenate([np.sin(out), np.cos(out)], axis=1)


def get_2d_sincos_pos_embed(embed_dim, grid_size):
    grid_h = np.arange(grid_size, dtype=np.float32)
    grid_w = np.arange(grid_size, dtype=np.float32)
    grid = np.meshgrid(grid_w, grid_h)
    grid = np.stack(grid, axis=0).reshape([2, 1, grid_size, grid_size])
    emb_h = get_1d_sincos_pos_embed_from_grid(embed_dim // 2, grid[0])
    emb_w = get_1d_sincos_pos_embed_from_grid(embed_dim // 2, grid[1])
    return np.concatenate([emb_h, emb_w], axis=1).astype(np.float32)


def bilinear_1d_matrix(src, dst):
    """Row i holds PyTorch F.interpolate(mode='bilinear', align_corners=False)
    weights along one axis (identity when src == dst)."""
    M = np.zeros((dst, src), np.float32)
    scale = src / dst
    for i in range(dst):
        x = scale * (i + 0.5) - 0.5
        if x < 0.0:
            x = 0.0
        x0 = int(np.floor(x))
        x1 = min(x0 + 1, src - 1)
        l1 = x - x0
        M[i, x0] += 1.0 - l1
        M[i, x1] += l1
    return M


def subimage_boxes(H, W, num_windows):
    """generate_subimage_coordinates + slice_image_feature_fm9g crop logic."""
    ratio = H * W / num_windows
    wh = W / H
    crop_h = math.sqrt(ratio / wh)
    crop_w = crop_h * wh
    rows = int(round(H / crop_h))
    cols = int(round(W / crop_w))
    assert rows * cols == num_windows, (H, W, crop_h, crop_w)
    boxes = []
    for i in range(rows):
        for j in range(cols):
            x1, y1 = j * crop_w, i * crop_h
            boxes.append((x1, y1, x1 + crop_w, y1 + crop_h))
    return boxes


def _roi_bilinear_weights(H, W, y, x):
    """torchvision roi_align bilinear_interpolate (aligned=False) weights."""
    out = {}
    if y < -1.0 or y > H or x < -1.0 or x > W:
        return out
    if y <= 0:
        y = 0.0
    if x <= 0:
        x = 0.0
    y_low, x_low = int(y), int(x)
    if y_low >= H - 1:
        y_low = y_high = H - 1
        y = float(y_low)
    else:
        y_high = y_low + 1
    if x_low >= W - 1:
        x_low = x_high = W - 1
        x = float(x_low)
    else:
        x_high = x_low + 1
    ly, lx = y - y_low, x - x_low
    hy, hx = 1.0 - ly, 1.0 - lx
    for yy, xx, ww in ((y_low, x_low, hy * hx), (y_low, x_high, hy * lx),
                       (y_high, x_low, ly * hx), (y_high, x_high, ly * lx)):
        idx = yy * W + xx
        out[idx] = out.get(idx, 0.0) + ww
    return out


def roi_align_matrix(H, W, boxes, out_hw=(3, 3)):
    """RoIAlign(spatial_scale=1, sampling_ratio=-1, aligned=False) as a matrix."""
    ph_n, pw_n = out_hw
    M = np.zeros((len(boxes) * ph_n * pw_n, H * W), np.float32)
    for r, (x1, y1, x2, y2) in enumerate(boxes):
        roi_w = max(x2 - x1, 1.0)
        roi_h = max(y2 - y1, 1.0)
        bin_h = roi_h / ph_n
        bin_w = roi_w / pw_n
        grid_h = int(math.ceil(roi_h / ph_n))
        grid_w = int(math.ceil(roi_w / pw_n))
        count = max(grid_h * grid_w, 1)
        for ph in range(ph_n):
            for pw in range(pw_n):
                row = r * ph_n * pw_n + ph * pw_n + pw
                for iy in range(grid_h):
                    y = y1 + ph * bin_h + (iy + 0.5) * bin_h / grid_h
                    for ix in range(grid_w):
                        x = x1 + pw * bin_w + (ix + 0.5) * bin_w / grid_w
                        for idx, ww in _roi_bilinear_weights(H, W, y, x).items():
                            M[row, idx] += ww / count
    return M


# ----------------------------------------------------------------------------
# Cached device constants (hoisted out of the per-image / per-scale loop).
# ----------------------------------------------------------------------------
@functools.lru_cache(maxsize=None)
def _interp_matrix(src, dst):
    return jnp.asarray(bilinear_1d_matrix(src, dst))


@functools.lru_cache(maxsize=None)
def _stage_b_consts(Hs, Ws, G, nq):
    """RoI operator (bf16, [nq*9, Hs, Ws]), (RoI @ pos-resample) operator and
    RoI row sums, per destination (Hs, Ws)."""
    wroi = roi_align_matrix(Hs, Ws, subimage_boxes(Hs, Ws, nq), (3, 3))
    pos_resample = np.kron(bilinear_1d_matrix(G, Hs), bilinear_1d_matrix(G, Ws))
    wroi_pos = wroi @ pos_resample                       # [nq*9, G*G]
    rowsum = wroi.sum(axis=1, keepdims=True)             # [nq*9, 1]
    wroi3 = wroi.reshape(nq * 9, Hs, Ws)
    return (jnp.asarray(wroi3, dtype=_MXU_DT),           # bf16: halves stream bytes
            jnp.asarray(wroi_pos),
            jnp.asarray(rowsum))


def _pick_row_block(nrows, row_bytes, multiple=8, budget=None):
    """Largest multiple-of-`multiple` divisor of nrows whose (double-buffered)
    block fits the streamed-operand VMEM budget.  Falls back to the full extent
    when no valid tile exists (full extent is always legal)."""
    if budget is None:
        budget = _STREAM_BUDGET
    cands = [t for t in range(multiple, nrows, multiple) if nrows % t == 0]
    if not cands:
        return nrows
    fit = [t for t in cands if 2 * t * row_bytes <= budget]
    return max(fit) if fit else min(cands)


def _const_spec(shape):
    n = len(shape)
    return pl.BlockSpec(shape, lambda b: (0,) * n)


# ----------------------------------------------------------------------------
# Pallas kernels.
# ----------------------------------------------------------------------------
def _proj2_kernel(feat_ref, w1T_ref, b1_ref, w4T_ref, b4_ref, o1_ref, o4_ref):
    """1x and 4x channel projections of the same source rows (fused, bf16 out)."""
    x = feat_ref[...]
    o1_ref[...] = (jnp.dot(x, w1T_ref[...], preferred_element_type=jnp.float32)
                   + b1_ref[...]).astype(o1_ref.dtype)
    o4_ref[...] = (jnp.dot(x, w4T_ref[...], preferred_element_type=jnp.float32)
                   + b4_ref[...]).astype(o4_ref.dtype)


def _kv_scale_kernel(x_ref, mw_ref, mh_ref, roi_ref, g_ref, b_ref, kb_ref,
                     key_ref, val_ref, acc_ref, xw_ref,
                     *, h, w, Ws, C, nq9, identity_h, identity_w):
    """Fused per-scale key/value path.

    k == 0           : W-axis bilinear expansion of the resident source into a
                       VMEM scratch (no HBM round trip of the upsampled slab).
    every grid step k: one large 2-D MXU matmul for the H-axis expansion of
                       this destination-row block, ln_kv, and the RoIAlign
                       contraction accumulated across the reduction grid.
    k == nk-1        : value = acc ; key = acc + precomputed bias
                       (RoI(pos-resample) + RoI(1)*scale-embedding).
    """
    k = pl.program_id(0)
    nk = pl.num_programs(0)
    tH = mh_ref.shape[0]

    @pl.when(k == 0)
    def _init():
        acc_ref[...] = jnp.zeros_like(acc_ref)
        if identity_w:
            xw_ref[...] = x_ref[...]
        else:
            # batched MXU matmul over the h source rows (done once per call):
            # [h, Ws, w] x [h, w, C] -> [h, Ws, C]
            x3 = x_ref[...].reshape(h, w, C)
            mwb = jnp.broadcast_to(mw_ref[...].astype(_MXU_DT)[None], (h, Ws, w))
            xw = lax.dot_general(mwb, x3, (((2,), (1,)), ((0,), (0,))),
                                 preferred_element_type=jnp.float32)
            xw_ref[...] = xw.reshape(h, Ws * C).astype(xw_ref.dtype)

    # H-axis expansion for this destination-row block: one clean 2-D matmul
    # [tH, h] @ [h, Ws*C] that keeps the MXU full (or a plain row slice when
    # the scale is 1x).
    if identity_h:
        start = pl.multiple_of(k * tH, tH)
        up = xw_ref[pl.ds(start, tH), :].astype(jnp.float32)
    else:
        up = jnp.dot(mh_ref[...].astype(_MXU_DT), xw_ref[...],
                     preferred_element_type=jnp.float32)            # [tH, Ws*C]
    up = up.reshape(tH * Ws, C)

    # ln_kv (eps = 1e-6, matching the reference norm_layer)
    mu = jnp.mean(up, axis=-1, keepdims=True)
    xc = up - mu
    var = jnp.mean(xc * xc, axis=-1, keepdims=True)
    ln = xc * lax.rsqrt(var + _EPS) * g_ref[...] + b_ref[...]

    # RoIAlign contraction over this block's spatial rows (accumulated).
    roi = roi_ref[...].reshape(nq9, tH * Ws)                        # bf16
    acc_ref[...] += jnp.dot(roi, ln.astype(_MXU_DT),
                            preferred_element_type=jnp.float32)

    @pl.when(k == nk - 1)
    def _fin():
        acc = acc_ref[...]
        val_ref[...] = acc
        key_ref[...] = acc + kb_ref[...]


def _attn_mlp_kernel(query_ref, lnqg_ref, lnqb_ref, posq_ref,
                     keys_ref, vals_ref,
                     wqT_ref, bq_ref, wkT_ref, bk_ref, wvT_ref, bv_ref,
                     woT_ref, bo_ref, hp_ref, hpT_ref,
                     lnpg_ref, lnpb_ref, lnog_ref, lnob_ref,
                     w1T_ref, b1_ref, w2T_ref, b2_ref, proj_ref,
                     o_ref, *, num_heads):
    """ln_q + pos, block-diagonal MHA (each window attends to its own T kv
    tokens; no dense mask, no per-head loop), ln_proj, ln_post, MLP, @proj.
    Runs once per image (leading grid axis), weights stay VMEM-resident."""
    nq, T, C = keys_ref.shape
    d = C // num_heads
    scale = 1.0 / math.sqrt(d)

    def _ln(x, g, b):
        mu = jnp.mean(x, axis=-1, keepdims=True)
        xc = x - mu
        var = jnp.mean(xc * xc, axis=-1, keepdims=True)
        return xc * lax.rsqrt(var + _EPS) * g + b

    def _mm(a, bm):
        return jnp.dot(a.astype(_MXU_DT), bm.astype(_MXU_DT),
                       preferred_element_type=jnp.float32)

    # query path (unfold(k=1, s=1) is an identity regroup)
    q = _ln(query_ref[...], lnqg_ref[...], lnqb_ref[...]) + posq_ref[...]
    qp = (_mm(q, wqT_ref[...]) + bq_ref[...]) * scale              # [nq, C]

    kf = keys_ref[...].reshape(nq * T, C)
    vf = vals_ref[...].reshape(nq * T, C)
    kp = _mm(kf, wkT_ref[...]) + bk_ref[...]                       # [nq*T, C]
    vp = _mm(vf, wvT_ref[...]) + bv_ref[...]

    # per-head scores via a head-pooling matmul (no lane-splitting reshapes)
    prod = kp.reshape(nq, T, C) * qp[:, None, :]                   # [nq, T, C]
    s = jnp.dot(prod.reshape(nq * T, C), hp_ref[...],
                preferred_element_type=jnp.float32)                # [nq*T, H]
    s3 = s.reshape(nq, T, num_heads)
    s3 = s3 - jnp.max(s3, axis=1, keepdims=True)
    p3 = jnp.exp(s3)
    p3 = p3 / jnp.sum(p3, axis=1, keepdims=True)                   # exact softmax
    pexp = jnp.dot(p3.reshape(nq * T, num_heads), hpT_ref[...],
                   preferred_element_type=jnp.float32)             # [nq*T, C]
    ctx = jnp.sum((pexp * vp).reshape(nq, T, C), axis=1)           # [nq, C]
    attn = _mm(ctx, woT_ref[...]) + bo_ref[...]

    # ln_proj -> ln_post -> out_mlp -> @proj
    x = _ln(attn, lnpg_ref[...], lnpb_ref[...])
    x = _ln(x, lnog_ref[...], lnob_ref[...])
    hmid = _mm(x, w1T_ref[...]) + b1_ref[...]
    # TODO(synk): reference uses exact erf-GELU; tanh-approx GELU used for
    # portability of the Mosaic lowering.
    hmid = jax.nn.gelu(hmid, approximate=True)
    y = _mm(hmid, w2T_ref[...]) + b2_ref[...]
    o_ref[...] = _mm(y, proj_ref[...])


# ----------------------------------------------------------------------------
# pallas_call wrappers.
# ----------------------------------------------------------------------------
def _project_both(feat_bf, params):
    S, C = feat_bf.shape
    tM = _pick_row_block(S, 6 * C, multiple=16)        # bf16 in + two bf16 outs
    w1 = params['proj1x_wT'].astype(_MXU_DT)
    w4 = params['proj4x_wT'].astype(_MXU_DT)
    return pl.pallas_call(
        _proj2_kernel,
        out_shape=(jax.ShapeDtypeStruct((S, C), _MXU_DT),
                   jax.ShapeDtypeStruct((S, C), _MXU_DT)),
        grid=(S // tM,),
        in_specs=[pl.BlockSpec((tM, C), lambda k: (k, 0)),
                  pl.BlockSpec((C, C), lambda k: (0, 0)),
                  pl.BlockSpec((1, C), lambda k: (0, 0)),
                  pl.BlockSpec((C, C), lambda k: (0, 0)),
                  pl.BlockSpec((1, C), lambda k: (0, 0))],
        out_specs=(pl.BlockSpec((tM, C), lambda k: (k, 0)),
                   pl.BlockSpec((tM, C), lambda k: (k, 0))),
        compiler_params=_cparams(("parallel",)),
    )(feat_bf, w1, params['proj1x_b'], w4, params['proj4x_b'])


def _kv_scale(x_src, src_hw, dst_hw, emb, params):
    """One scale's fused (upsample + ln_kv + RoIAlign) key/value computation."""
    h, w = src_hw
    Hs, Ws = dst_hw
    C = params['kv_dim']
    nq = params['num_queries']
    G = params['grid_size']
    nq9 = nq * 9
    identity_h = (Hs == h)
    identity_w = (Ws == w)

    wroi3, wroi_pos, rowsum = _stage_b_consts(Hs, Ws, G, nq)
    # Data-independent key bias folded outside the kernel:
    #   RoI(resampled pos-embed) + RoI(1) * scale-embedding.
    key_bias = (jnp.dot(wroi_pos, params['pos_embed'],
                        preferred_element_type=jnp.float32) + rowsum * emb)

    mw = jnp.eye(w, dtype=jnp.float32) if identity_w else _interp_matrix(w, Ws)
    mh = jnp.eye(h, dtype=jnp.float32) if identity_h else _interp_matrix(h, Hs)

    # streamed bytes per destination row: bf16 RoI slice + f32 Mh row.
    tH = _pick_row_block(Hs, nq9 * Ws * 2 + h * 4, multiple=16)
    nk = Hs // tH
    f32 = jnp.float32

    kernel = functools.partial(_kv_scale_kernel, h=h, w=w, Ws=Ws, C=C, nq9=nq9,
                               identity_h=identity_h, identity_w=identity_w)
    grid_spec = pltpu.PrefetchScalarGridSpec(
        num_scalar_prefetch=0,
        grid=(nk,),
        in_specs=[
            pl.BlockSpec((h, w * C), lambda k: (0, 0)),        # projected source (bf16)
            pl.BlockSpec((Ws, w), lambda k: (0, 0)),           # Mw (W upsample)
            pl.BlockSpec((tH, h), lambda k: (k, 0)),           # Mh block (H upsample)
            pl.BlockSpec((nq9, tH, Ws), lambda k: (0, k, 0)),  # RoI operator slice (bf16)
            pl.BlockSpec((1, C), lambda k: (0, 0)),            # ln_kv gamma
            pl.BlockSpec((1, C), lambda k: (0, 0)),            # ln_kv beta
            pl.BlockSpec((nq9, C), lambda k: (0, 0)),          # key bias (pos + emb)
        ],
        out_specs=(pl.BlockSpec((nq9, C), lambda k: (0, 0)),
                   pl.BlockSpec((nq9, C), lambda k: (0, 0))),
        scratch_shapes=[pltpu.VMEM((nq9, C), f32),             # RoI accumulator
                        pltpu.VMEM((h, Ws * C), _MXU_DT)],     # W-expanded source
    )
    return pl.pallas_call(
        kernel,
        out_shape=(jax.ShapeDtypeStruct((nq9, C), f32),
                   jax.ShapeDtypeStruct((nq9, C), f32)),
        grid_spec=grid_spec,
        compiler_params=_cparams(("arbitrary",)),
    )(x_src, mw, mh, wroi3, params['ln_kv_g'], params['ln_kv_b'], key_bias)


def _attn_mlp(keys, vals, headP, headPT, params):
    """Batched over images ('parallel' grid); weights resident across the batch."""
    bs, nq, T, C = keys.shape
    E = params['embed_dim']
    bf = lambda a: a.astype(_MXU_DT)
    args = (params['query'], params['ln_q_g'], params['ln_q_b'], params['pos_embed'],
            keys, vals,
            bf(params['wqT']), params['bq'], bf(params['wkT']), params['bk'],
            bf(params['wvT']), params['bv'], bf(params['woT']), params['bo'],
            headP, headPT,
            params['ln_proj_g'], params['ln_proj_b'],
            params['ln_post_g'], params['ln_post_b'],
            bf(params['mlp_w1T']), params['mlp_b1'],
            bf(params['mlp_w2T']), params['mlp_b2'],
            bf(params['proj']))
    kv_spec = pl.BlockSpec((None, nq, T, C), lambda b: (b, 0, 0, 0))
    in_specs = []
    for idx, a in enumerate(args):
        in_specs.append(kv_spec if idx in (4, 5) else _const_spec(a.shape))
    kernel = functools.partial(_attn_mlp_kernel, num_heads=params['num_heads'])
    # TODO(synk): for production C/E on v7x (64 MiB VMEM) the MLP/out-proj
    # weights should additionally be tiled over the hidden / output dims.
    return pl.pallas_call(
        kernel,
        out_shape=jax.ShapeDtypeStruct((bs, nq, E), jnp.float32),
        grid=(bs,),
        in_specs=in_specs,
        out_specs=pl.BlockSpec((None, nq, E), lambda b: (b, 0, 0)),
        compiler_params=_cparams(("parallel",)),
    )(*args)


# ----------------------------------------------------------------------------
# Parameters (deterministic, synthetic).
# ----------------------------------------------------------------------------
def init_params(key, num_queries, embed_dim, num_heads, kv_dim):
    G = int(math.sqrt(num_queries))
    assert G * G == num_queries and kv_dim % num_heads == 0 and kv_dim % 4 == 0
    ks = jax.random.split(key, 12)
    C = kv_dim

    def tn(k, shape, std=0.02):
        return (std * jax.random.truncated_normal(k, -2.0, 2.0, shape)).astype(jnp.float32)

    ones = lambda s: jnp.ones(s, jnp.float32)
    zeros = lambda s: jnp.zeros(s, jnp.float32)
    return dict(
        num_queries=num_queries, grid_size=G, kv_dim=C, embed_dim=embed_dim,
        num_heads=num_heads,
        pos_embed=jnp.asarray(get_2d_sincos_pos_embed(C, G)),         # [G*G, C]
        emb_1x=zeros((1, C)), emb_4x=zeros((1, C)),                   # nn.Parameter zeros
        query=tn(ks[0], (num_queries, C)),
        proj1x_wT=tn(ks[1], (C, C)), proj1x_b=zeros((1, C)),
        proj4x_wT=tn(ks[2], (C, C)), proj4x_b=zeros((1, C)),
        ln_kv_g=ones((1, C)), ln_kv_b=zeros((1, C)),
        ln_q_g=ones((1, C)), ln_q_b=zeros((1, C)),
        ln_proj_g=ones((1, C)), ln_proj_b=zeros((1, C)),
        ln_post_g=ones((1, C)), ln_post_b=zeros((1, C)),
        wqT=tn(ks[3], (C, C)), wkT=tn(ks[4], (C, C)), wvT=tn(ks[5], (C, C)),
        bq=zeros((1, C)), bk=zeros((1, C)), bv=zeros((1, C)),
        woT=tn(ks[6], (C, C)), bo=zeros((1, C)),
        mlp_w1T=tn(ks[7], (C, 2 * C)), mlp_b1=zeros((1, 2 * C)),
        mlp_w2T=tn(ks[8], (2 * C, embed_dim)), mlp_b2=zeros((1, embed_dim)),
        proj=((embed_dim ** -0.5)
              * jax.random.normal(ks[9], (embed_dim, embed_dim), jnp.float32)),
    )


# ----------------------------------------------------------------------------
# Forward pass (mirrors Resampler.forward).
# ----------------------------------------------------------------------------
def resampler_forward(params, features, patch_sizes):
    C = params['kv_dim']
    nq = params['num_queries']
    Hh = params['num_heads']
    d = C // Hh

    # head-pooling operators for the block-diagonal attention (host constants)
    hp_np = np.zeros((C, Hh), np.float32)
    hp_np[np.arange(C), np.arange(C) // d] = 1.0
    headP = jnp.asarray(hp_np)
    headPT = jnp.asarray(hp_np.T)

    keys_list, vals_list = [], []
    for i in range(len(patch_sizes)):
        h, w = int(patch_sizes[i][0]), int(patch_sizes[i][1])
        # reference casts the (interpolated) f32 feature to bf16 before the
        # projector; projection commutes with the bilinear upsample (rows sum
        # to 1, bias passes through), so both scales project at source res.
        feat_bf = features[i][: h * w, :].astype(_MXU_DT)             # [h*w, C]
        src1, src4 = _project_both(feat_bf, params)                   # bf16

        per = []
        for src, (Hs, Ws), emb in ((src1, (h, w), params['emb_1x']),
                                   (src4, (4 * h, 4 * w), params['emb_4x'])):
            ku, vu = _kv_scale(src.reshape(h, w * C), (h, w), (Hs, Ws), emb, params)
            per.append((ku.reshape(nq, 9, C), vu.reshape(nq, 9, C)))
        keys_list.append(jnp.concatenate([per[0][0], per[1][0]], axis=1))  # [nq,18,C]
        vals_list.append(jnp.concatenate([per[0][1], per[1][1]], axis=1))

    keys = jnp.stack(keys_list, axis=0)                               # [bs, nq, 18, C]
    vals = jnp.stack(vals_list, axis=0)
    # TODO(synk): on v7x, additionally split stage-B's nq*9 output rows across
    # the two TensorCores and use a separable (kron) RoI factorization to cut
    # stage-B FLOPs/bytes ~10x at production sizes.
    return _attn_mlp(keys, vals, headP, headPT, params)               # [bs, nq, E]


# ----------------------------------------------------------------------------
if __name__ == "__main__":
    num_queries, kv_dim, num_heads, embed_dim = 4, 128, 4, 128
    params = init_params(jax.random.PRNGKey(0), num_queries, embed_dim,
                         num_heads, kv_dim)

    patch_sizes = np.array([[4, 4], [8, 8]], dtype=np.int32)          # per-image (h, w)
    fkeys = jax.random.split(jax.random.PRNGKey(0), patch_sizes.shape[0] + 1)[1:]
    features = [jax.random.normal(fkeys[i],
                                  (int(patch_sizes[i][0]) * int(patch_sizes[i][1]), kv_dim),
                                  jnp.float32)
                for i in range(patch_sizes.shape[0])]

    out = resampler_forward(params, features, patch_sizes)
    out = jax.block_until_ready(out)
    assert out.shape == (patch_sizes.shape[0], num_queries, embed_dim), out.shape
    assert bool(jnp.all(jnp.isfinite(out)))
    print("KERNEL_OK")
</pallas_src>

<mosaic_0001>
module attributes {stable_mosaic.version = 11 : i64} {
  func.func @_proj2_kernel(%arg0: i32, %arg1: memref<16x128xbf16, #tpu.memory_space<vmem>>, %arg2: memref<128x128xbf16, #tpu.memory_space<vmem>>, %arg3: memref<1x128xf32, #tpu.memory_space<vmem>>, %arg4: memref<128x128xbf16, #tpu.memory_space<vmem>>, %arg5: memref<1x128xf32, #tpu.memory_space<vmem>>, %arg6: memref<16x128xbf16, #tpu.memory_space<vmem>>, %arg7: memref<16x128xbf16, #tpu.memory_space<vmem>>) attributes {dimension_semantics = [#tpu.dimension_semantics<parallel>], iteration_bounds = array<i64: 1>, scalar_prefetch = 0 : i64, scratch_operands = 0 : i64, tpu.core_type = #tpu.core_type<tc>, window_params = [{transform_indices = @transform_0, window_bounds = array<i64: 16, 128>}, {pipeline_mode = #tpu.pipeline_mode<synchronous>, transform_indices = @transform_1, window_bounds = array<i64: 128, 128>}, {pipeline_mode = #tpu.pipeline_mode<synchronous>, transform_indices = @transform_2, window_bounds = array<i64: 1, 128>}, {pipeline_mode = #tpu.pipeline_mode<synchronous>, transform_indices = @transform_3, window_bounds = array<i64: 128, 128>}, {pipeline_mode = #tpu.pipeline_mode<synchronous>, transform_indices = @transform_4, window_bounds = array<i64: 1, 128>}, {transform_indices = @transform_5, window_bounds = array<i64: 16, 128>}, {transform_indices = @transform_6, window_bounds = array<i64: 16, 128>}]} {
    %c0 = arith.constant 0 : index
    %c0_0 = arith.constant 0 : index
    %0 = vector.load %arg1[%c0, %c0_0] : memref<16x128xbf16, #tpu.memory_space<vmem>>, vector<16x128xbf16>
    %c0_1 = arith.constant 0 : index
    %c0_2 = arith.constant 0 : index
    %1 = vector.load %arg2[%c0_1, %c0_2] : memref<128x128xbf16, #tpu.memory_space<vmem>>, vector<128x128xbf16>
    %cst = arith.constant dense<0.000000e+00> : vector<16x128xf32>
    %2 = tpu.matmul %0, %1, %cst {dimension_numbers = #tpu.dot_dimension_numbers<[1], [0], [0], [1], [0, 0, 1, 1], [], []>} : vector<16x128xbf16>, vector<128x128xbf16>, vector<16x128xf32> -> vector<16x128xf32>
    %c0_3 = arith.constant 0 : index
    %c0_4 = arith.constant 0 : index
    %3 = vector.load %arg3[%c0_3, %c0_4] : memref<1x128xf32, #tpu.memory_space<vmem>>, vector<1x128xf32>
    %4 = vector.broadcast %3 : vector<1x128xf32> to vector<16x128xf32>
    %5 = arith.addf %2, %4 : vector<16x128xf32>
    %6 = arith.truncf %5 : vector<16x128xf32> to vector<16x128xbf16>
    %c0_5 = arith.constant 0 : index
    %c0_6 = arith.constant 0 : index
    %7 = vector.load %arg6[%c0_5, %c0_6] : memref<16x128xbf16, #tpu.memory_space<vmem>>, vector<16x128xbf16>
    tpu.vector_store %arg6[%c0_5, %c0_6], %6 {strides = array<i32>} : memref<16x128xbf16, #tpu.memory_space<vmem>>, vector<16x128xbf16>,
    %c0_7 = arith.constant 0 : index
    %c0_8 = arith.constant 0 : index
    %8 = vector.load %arg4[%c0_7, %c0_8] : memref<128x128xbf16, #tpu.memory_space<vmem>>, vector<128x128xbf16>
    %cst_9 = arith.constant dense<0.000000e+00> : vector<16x128xf32>
    %9 = tpu.matmul %0, %8, %cst_9 {dimension_numbers = #tpu.dot_dimension_numbers<[1], [0], [0], [1], [0, 0, 1, 1], [], []>} : vector<16x128xbf16>, vector<128x128xbf16>, vector<16x128xf32> -> vector<16x128xf32>
    %c0_10 = arith.constant 0 : index
    %c0_11 = arith.constant 0 : index
    %10 = vector.load %arg5[%c0_10, %c0_11] : memref<1x128xf32, #tpu.memory_space<vmem>>, vector<1x128xf32>
    %11 = vector.broadcast %10 : vector<1x128xf32> to vector<16x128xf32>
    %12 = arith.addf %9, %11 : vector<16x128xf32>
    %13 = arith.truncf %12 : vector<16x128xf32> to vector<16x128xbf16>
    %c0_12 = arith.constant 0 : index
    %c0_13 = arith.constant 0 : index
    %14 = vector.load %arg7[%c0_12, %c0_13] : memref<16x128xbf16, #tpu.memory_space<vmem>>, vector<16x128xbf16>
    tpu.vector_store %arg7[%c0_12, %c0_13], %13 {strides = array<i32>} : memref<16x128xbf16, #tpu.memory_space<vmem>>, vector<16x128xbf16>,
    return
  }
  func.func @transform_0(%arg0: i32) -> (i32, i32) {
    %c0_i32 = arith.constant 0 : i32
    %c0_i32_0 = arith.constant 0 : i32
    return %arg0, %c0_i32 : i32, i32
  }
  func.func @transform_1(%arg0: i32) -> (i32, i32) {
    %c0_i32 = arith.constant 0 : i32
    %c0_i32_0 = arith.constant 0 : i32
    %c0_i32_1 = arith.constant 0 : i32
    return %c0_i32, %c0_i32_0 : i32, i32
  }
  func.func @transform_2(%arg0: i32) -> (i32, i32) {
    %c0_i32 = arith.constant 0 : i32
    %c0_i32_0 = arith.constant 0 : i32
    %c0_i32_1 = arith.constant 0 : i32
    return %c0_i32, %c0_i32_0 : i32, i32
  }
  func.func @transform_3(%arg0: i32) -> (i32, i32) {
    %c0_i32 = arith.constant 0 : i32
    %c0_i32_0 = arith.constant 0 : i32
    %c0_i32_1 = arith.constant 0 : i32
    return %c0_i32, %c0_i32_0 : i32, i32
  }
  func.func @transform_4(%arg0: i32) -> (i32, i32) {
    %c0_i32 = arith.constant 0 : i32
    %c0_i32_0 = arith.constant 0 : i32
    %c0_i32_1 = arith.constant 0 : i32
    return %c0_i32, %c0_i32_0 : i32, i32
  }
  func.func @transform_5(%arg0: i32) -> (i32, i32) {
    %c0_i32 = arith.constant 0 : i32
    %c0_i32_0 = arith.constant 0 : i32
    return %arg0, %c0_i32 : i32, i32
  }
  func.func @transform_6(%arg0: i32) -> (i32, i32) {
    %c0_i32 = arith.constant 0 : i32
    %c0_i32_0 = arith.constant 0 : i32
    return %arg0, %c0_i32 : i32, i32
  }
}

</mosaic_0001>

<bundles_post_ra>
// kernel: tpu_custom_call.1
= control target key start
LH: loop header
LB: loop body
LE: loop exit
PB: predicated region body
PF: predicated region fallthrough
CT: control target
= control target key end

     0   :  { %12 = vsyncpa [#allocation3], 0  ;;  %s730_s0 = inlined_call_operand.hbm [shape: bf16[16,128], index: 0, kind: input, shape index: {}]   ;;  %s731_s1 = inlined_call_operand.hbm [shape: bf16[128,128], index: 1, kind: input, shape index: {}]   ;;  %s732_s2 = inlined_call_operand.vmem [shape: f32[1,128], index: 2, kind: input, shape index: {}]   ;;  %s733_s3 = inlined_call_operand.hbm [shape: bf16[128,128], index: 3, kind: input, shape index: {}]   ;;  %s734_s4 = inlined_call_operand.vmem [shape: f32[1,128], index: 4, kind: input, shape index: {}]   ;;  %s735_s5 = inlined_call_operand.hbm [shape: bf16[16,128], index: 5, kind: output, shape index: {0}]   ;;  %s736_s6 = inlined_call_operand.hbm [shape: bf16[16,128], index: 6, kind: output, shape index: {1}]  }
   0x1   :  { %13 = vsyncpa [#allocation6], 0 }
   0x2   :  { %14 = vsyncpa [#allocation4], 0 }
   0x3   :  { %15 = vsyncpa [#allocation10], 0  ;;  %s591_s21 = smov [#allocation5]   ;;  %s592_s23 = smov [#allocation2]  }
   0x4   :  { %s33_s22 = sshll.u32 %s591_s21, 4  ;;  %s21_s24 = sshll.u32 %s592_s23, 4  ;;  %s34_s22 = int_to_ptr.vmem [resolvable:$true] %s33_s22  ;;  %s635_s24 = int_to_ptr.vmem [resolvable:$true] %s21_s24 }
   0x5   :  { %s473_s27 = scalar_lea.hbm %s731_s1, 1024 }
   0x6   :  { %p474_p0 = scmp.ne.s32.totalorder %s731_s1, %s473_s27  ;;  %p477_p1 = scmp.lt.u32.totalorder %s473_s27, %s731_s1 }
   0x8   :  { %p479_p2 = pnand %p477_p1, %p474_p0 }
   0xa   :  { %482 = shalt.err (!%p479_p2)
}
   0xb   :  { %s483_s8 = scalar_lea.vmem %s34_s22, 1024  ;;  %p488_p4 = scmp.lt.s32.totalorder %s34_s22, %s34_s22 }
   0xc   :  { %p484_p3 = scmp.ne.s32.totalorder %s34_s22, %s483_s8  ;;  %p489_p5 = scmp.lt.s32.totalorder %s483_s8, %s483_s8 }
   0xe   :  { %p490_p6 = por %p489_p5, %p488_p4 }
  0x10   :  { %p491_p7 = pnand %p490_p6, %p484_p3 }
  0x12   :  { %494 = shalt.err (!%p491_p7)
}
  0x13   :  { %s593_s9 = smov 64   ;;  %s594_s10 = smov 4  }
  0x14   :  { %39 = dma.hbm_to_vmem [thread:$0]  %s731_s1, 1024, %s34_s22, [#allocation6], %s593_s9, %s593_s9, %s594_s10  }
  0x15   :  { %s495_s15 = scalar_lea.hbm %s730_s0, 128 }
  0x16   :  { %p496_p8 = scmp.ne.s32.totalorder %s730_s0, %s495_s15  ;;  %p499_p9 = scmp.lt.u32.totalorder %s495_s15, %s730_s0 }
  0x18   :  { %p501_p10 = pnand %p499_p9, %p496_p8 }
  0x1a   :  { %504 = shalt.err (!%p501_p10)
}
  0x1b   :  { %s505_s20 = scalar_lea.vmem %s635_s24, 128  ;;  %p510_p12 = scmp.lt.s32.totalorder %s635_s24, %s635_s24 }
  0x1c   :  { %p506_p11 = scmp.ne.s32.totalorder %s635_s24, %s505_s20  ;;  %p511_p13 = scmp.lt.s32.totalorder %s505_s20, %s505_s20 }
  0x1e   :  { %p512_p0 = por %p511_p13, %p510_p12 }
  0x20   :  { %p513_p1 = pnand %p512_p0, %p506_p11 }
  0x22   :  { %516 = shalt.err (!%p513_p1)
}
  0x23   :  { %27 = dma.hbm_to_vmem [thread:$0]  %s730_s0, 128, %s635_s24, [#allocation3], %s593_s9, %s593_s9, %s594_s10  }
  0x24   :  { %s595_s22 = smov [#allocation7]   ;;  %s517_s27 = scalar_lea.hbm %s733_s3, 1024 }
  0x25   :  { %s47_s23 = sshll.u32 %s595_s22, 4  ;;  %p518_p2 = scmp.ne.s32.totalorder %s733_s3, %s517_s27  ;;  %s48_s23 = int_to_ptr.vmem [resolvable:$true] %s47_s23 }
  0x26   :  { %p521_p3 = scmp.lt.u32.totalorder %s517_s27, %s733_s3 }
  0x28   :  { %p523_p4 = pnand %p521_p3, %p518_p2 }
  0x2a   :  { %526 = shalt.err (!%p523_p4)
}
  0x2b   :  { %s527_s8 = scalar_lea.vmem %s48_s23, 1024  ;;  %p532_p6 = scmp.lt.s32.totalorder %s48_s23, %s48_s23 }
  0x2c   :  { %p528_p5 = scmp.ne.s32.totalorder %s48_s23, %s527_s8  ;;  %p533_p7 = scmp.lt.s32.totalorder %s527_s8, %s527_s8 }
  0x2e   :  { %p534_p8 = por %p533_p7, %p532_p6 }
  0x30   :  { %p535_p9 = pnand %p534_p8, %p528_p5 }
  0x32   :  { %538 = shalt.err (!%p535_p9)
}
  0x33   :  { %53 = dma.hbm_to_vmem [thread:$0]  %s733_s3, 1024, %s48_s23, [#allocation6], %s593_s9, %s593_s9, %s594_s10  }
  0x34   :  { %583 = dma.done.wait [#allocation3], 128  }
  0x35   :  { %584 = vsyncadd [#allocation3], 4294967168 }
  0x36   :  { %585 = dma.done.wait [#allocation6], 2048  }
  0x37   :  { %586 = vsyncadd [#allocation6], 4294965248  ;;  %v596_v0 = vmov 0.0   ;;  %vm597_vm0 = vmmov 0   ;;  %v456_v1 = vld [vmem:[#allocation5] sm:$0xff]   ;;  %v458_v3 = vld [vmem:[#allocation5 + $0x8] sm:$0xff]  }
  0x38   :  { %407 = vmatprep.subr.bf16.mxu0 %v596_v0  ;;  %427 = vmatprep.subr.bf16.mxu1 %v596_v0  ;;  %v457_v2 = vld [vmem:[#allocation7] sm:$0xff]   ;;  %v459_v4 = vld [vmem:[#allocation7 + $0x8] sm:$0xff]   ;;  %v460_v5 = vld [vmem:[#allocation5 + $0x10] sm:$0xff]   ;;  %s598_s14 = smov [#allocation8]   ;;  %s599_s16 = smov [#allocation9]  }
  0x39   :  { %423 = vmatprep.mubr.msk.bf16.mxu0 %vm597_vm0, %v596_v0  ;;  %443 = vmatprep.mubr.msk.bf16.mxu1 %vm597_vm0, %v596_v0  ;;  %v461_v6 = vld [vmem:[#allocation7 + $0x10] sm:$0xff]   ;;  %v462_v7 = vld [vmem:[#allocation5 + $0x18] sm:$0xff]   ;;  %v464_v9 = vld [vmem:[#allocation5 + $0x20] sm:$0xff]   ;;  %s323_s15 = sshll.u32 %s598_s14, 4  ;;  %s335_s17 = sshll.u32 %s599_s16, 4  ;;  %s324_s15 = int_to_ptr.vmem [resolvable:$true] %s323_s15  ;;  %s693_s17 = int_to_ptr.vmem [resolvable:$true] %s335_s17 }
  0x3a   :  { %408 = vmatpush3.bf16.msra.mxu0 %v456_v1  ;;  %428 = vmatpush3.bf16.msra.mxu1 %v457_v2  ;;  %v463_v8 = vld [vmem:[#allocation7 + $0x18] sm:$0xff]   ;;  %v465_v10 = vld [vmem:[#allocation7 + $0x20] sm:$0xff]   ;;  %v466_v11 = vld [vmem:[#allocation5 + $0x28] sm:$0xff]   ;;  %p544_p11 = scmp.lt.s32.totalorder %s324_s15, %s324_s15 }
  0x3b   :  { %409 = vmatprep.subr.bf16.mxu0 %v596_v0  ;;  %429 = vmatprep.subr.bf16.mxu1 %v596_v0  ;;  %v467_v12 = vld [vmem:[#allocation7 + $0x28] sm:$0xff]   ;;  %v468_v13 = vld [vmem:[#allocation5 + $0x30] sm:$0xff]   ;;  %v470_v15 = vld [vmem:[#allocation5 + $0x38] sm:$0xff]  }
  0x3c   :  { %v469_v14 = vld [vmem:[#allocation7 + $0x30] sm:$0xff]   ;;  %v471_v16 = vld [vmem:[#allocation7 + $0x38] sm:$0xff]  }
  0x3d   :  { %v472_v17 = vld [vmem:[#allocation2] sm:$0xff]  }
  0x3e   :  { %410 = vmatpush3.bf16.msra.mxu0 %v458_v3  ;;  %430 = vmatpush3.bf16.msra.mxu1 %v459_v4  ;;  %v352_v18 = vld [vmem:[%s732_s2] ss:$0 sm:$0xff]  ;;  %s539_s2 = scalar_lea.vmem %s324_s15, 128 }
  0x3f   :  { %411 = vmatprep.subr.bf16.mxu0 %v596_v0  ;;  %431 = vmatprep.subr.bf16.mxu1 %v596_v0  ;;  %v364_v20 = vld [vmem:[%s734_s4] ss:$0 sm:$0xff]  ;;  %p540_p10 = scmp.ne.s32.totalorder %s324_s15, %s539_s2  ;;  %p545_p12 = scmp.lt.s32.totalorder %s539_s2, %s539_s2 }
  0x41   :  { %p546_p13 = por %p545_p12, %p544_p11 }
  0x42   :  { %412 = vmatpush3.bf16.msra.mxu0 %v460_v5  ;;  %432 = vmatpush3.bf16.msra.mxu1 %v461_v6 }
  0x43   :  { %413 = vmatprep.subr.bf16.mxu0 %v596_v0  ;;  %433 = vmatprep.subr.bf16.mxu1 %v596_v0  ;;  %p547_p0 = pnand %p546_p13, %p540_p10 }
  0x46   :  { %414 = vmatpush3.bf16.msra.mxu0 %v462_v7  ;;  %434 = vmatpush3.bf16.msra.mxu1 %v463_v8 }
  0x47   :  { %415 = vmatprep.subr.bf16.mxu0 %v596_v0  ;;  %435 = vmatprep.subr.bf16.mxu1 %v596_v0 }
  0x4a   :  { %416 = vmatpush3.bf16.msra.mxu0 %v464_v9  ;;  %436 = vmatpush3.bf16.msra.mxu1 %v465_v10 }
  0x4b   :  { %417 = vmatprep.subr.bf16.mxu0 %v596_v0  ;;  %437 = vmatprep.subr.bf16.mxu1 %v596_v0 }
  0x4e   :  { %418 = vmatpush3.bf16.msra.mxu0 %v466_v11  ;;  %438 = vmatpush3.bf16.msra.mxu1 %v467_v12 }
  0x4f   :  { %419 = vmatprep.subr.bf16.mxu0 %v596_v0  ;;  %439 = vmatprep.subr.bf16.mxu1 %v596_v0 }
  0x52   :  { %420 = vmatpush3.bf16.msra.mxu0 %v468_v13  ;;  %440 = vmatpush3.bf16.msra.mxu1 %v469_v14 }
  0x53   :  { %421 = vmatprep.subr.bf16.mxu0 %v596_v0  ;;  %441 = vmatprep.subr.bf16.mxu1 %v596_v0 }
  0x56   :  { %422 = vmatpush3.bf16.msra.mxu0 %v470_v15  ;;  %442 = vmatpush3.bf16.msra.mxu1 %v471_v16 }
  0x59   :  { %424 = vmatmul.mubr.bf16.vlgmr.msra.gmra.mrb[0].mxu0 %v472_v17  ;;  %444 = vmatmul.mubr.bf16.vlgmr.msra.gmra.mrb[0].mxu1 %v472_v17 }
 0x12c   :  { %v179_v19 = vpop.f32.mrb[0].mxu0  ;;  %v301_v21 = vpop.f32.mrb[0].mxu1 }
 0x12d   :  { %v425_v22 = vpop.f32.mrb[1].mxu0  ;;  %v445_v23 = vpop.f32.mrb[1].mxu1  ;;  %v180_v25 = vadd.f32 %v352_v18, %v179_v19  ;;  %v302_v29 = vadd.f32 %v364_v20, %v301_v21 }
 0x12e   :  { %v182_v24 = vpop.f32.mrb[2].mxu0  ;;  %v304_v27 = vpop.f32.mrb[2].mxu1 }
 0x12f   :  { %v183_v26 = vadd.f32 %v352_v18, %v182_v24  ;;  %v426_v28 = vpop.f32.mrb[3].mxu0  ;;  %v305_v30 = vadd.f32 %v364_v20, %v304_v27  ;;  %v446_v31 = vpop.f32.mrb[3].mxu1 }
 0x131   :  { %v382_v32 = vpack.c.bf16 %v183_v26, %v180_v25  ;;  %v387_v33 = vpack.c.bf16 %v305_v30, %v302_v29 }
 0x133   :  { %383 = vst [vmem:[#allocation8] sm:$0xff] %v382_v32   ;;  %388 = vst [vmem:[#allocation9] sm:$0xff] %v387_v33  }
 0x134   :  { %550 = shalt.err (!%p547_p0)
}
 0x135   :  { %s551_s19 = scalar_lea.hbm %s735_s5, 128 }
 0x136   :  { %p552_p1 = scmp.ne.s32.totalorder %s735_s5, %s551_s19  ;;  %p555_p2 = scmp.lt.u32.totalorder %s551_s19, %s735_s5 }
 0x138   :  { %p557_p3 = pnand %p555_p2, %p552_p1 }
 0x13a   :  { %560 = shalt.err (!%p557_p3)
}
 0x13b   :  { %329 = dma.vmem_to_hbm [thread:$0]  %s324_s15, 128, %s735_s5, [#allocation4], %s593_s9, %s593_s9, %s594_s10  }
 0x13c   :  { %s561_s26 = scalar_lea.vmem %s693_s17, 128  ;;  %p566_p5 = scmp.lt.s32.totalorder %s693_s17, %s693_s17 }
 0x13d   :  { %p562_p4 = scmp.ne.s32.totalorder %s693_s17, %s561_s26  ;;  %p567_p6 = scmp.lt.s32.totalorder %s561_s26, %s561_s26 }
 0x13f   :  { %p568_p7 = por %p567_p6, %p566_p5 }
 0x141   :  { %p569_p8 = pnand %p568_p7, %p562_p4 }
 0x143   :  { %572 = shalt.err (!%p569_p8)
}
 0x144   :  { %s573_s29 = scalar_lea.hbm %s736_s6, 128 }
 0x145   :  { %p574_p9 = scmp.ne.s32.totalorder %s736_s6, %s573_s29  ;;  %p577_p10 = scmp.lt.u32.totalorder %s573_s29, %s736_s6 }
 0x147   :  { %p579_p11 = pnand %p577_p10, %p574_p9 }
 0x149   :  { %582 = shalt.err (!%p579_p11)
}
 0x14a   :  { %341 = dma.vmem_to_hbm [thread:$0]  %s693_s17, 128, %s736_s6, [#allocation10], %s593_s9, %s593_s9, %s594_s10  }
 0x14b   :  { %587 = dma.done.wait [#allocation4], 128  }
 0x14c   :  { %588 = vsyncadd [#allocation4], 4294967168 }
 0x14d   :  { %589 = dma.done.wait [#allocation10], 128  }
 0x14e   :  { %590 = vsyncadd [#allocation10], 4294967168 }
 0x14f   :  { %348 = vsyncpa [#allocation3], 1 }
 0x150   :  { %349 = vsyncpa [#allocation6], 1 }
 0x151   :  { %350 = vsyncpa [#allocation4], 1 }
 0x152   :  { %351 = vsyncpa [#allocation10], 1 }

</bundles_post_ra>
